<compile_context>
chip_gen: v7x
topology: tpu7x:2x2x1
jax: 0.10.0
libtpu: 0.0.40
codegen_flags: <defaults>
</compile_context>

<pallas_src>
import functools
import math

import jax
import jax.numpy as jnp
from jax.experimental import pallas as pl
from jax.experimental.pallas import tpu as pltpu


def _round_up(v, m):
    return ((v + m - 1) // m) * m


def _vmem_tile_bytes(rows, cols, itemsize):
    """Lane/sublane-padded VMEM footprint of a (rows, cols) 2-D block."""
    sublane = 8 * max(1, 4 // itemsize)  # (8,128) tiles for f32, (16,128) for bf16
    return _round_up(rows, sublane) * _round_up(cols, 128) * itemsize


_RELU_FLAGS = (True, True, True, False, True, True, True, False)
# Which layer's activation is written to which output segment (None = decoder
# intermediate that the module's forward does not return).
_STORE_SEGMENT = ("enc_h1", "enc_h2", "enc_h3", "z", None, None, None, "x_bar")


def _ae_kernel(x_ref, *refs, seg_off, seg_w):
    """One batch tile through all 8 Linear(+ReLU) layers.

    refs = (W_e1, b_e1, ..., W_xbar, b_xbar, out_slab_ref).  Returned
    activations are stored into their lane slice of the single lane-dense
    output slab immediately after being produced, so at most one activation is
    live between layers and the per-step output writeback is one dense DMA.
    """
    out_ref = refs[-1]
    p_refs = refs[:-1]

    h = x_ref[...]
    for li in range(8):
        w_ref = p_refs[2 * li]
        b_ref = p_refs[2 * li + 1]
        # MXU matmul (bf16 or f32 operands), f32 accumulation, f32 bias add.
        h = jnp.dot(h.astype(w_ref.dtype), w_ref[...],
                    preferred_element_type=jnp.float32) + b_ref[...]
        if _RELU_FLAGS[li]:
            h = jnp.maximum(h, 0.0)
        seg = _STORE_SEGMENT[li]
        if seg is not None:
            off = seg_off[seg]
            out_ref[:, off:off + seg_w[seg]] = h.astype(out_ref.dtype)


def ae_forward(x, params, *, batch_tile=512, weight_dtype=jnp.bfloat16):
    """Runs the AE forward pass. Returns (x_bar, enc_h1, enc_h2, enc_h3, z)."""
    B, n_input = x.shape

    # params is a flat list [W_e1, b_e1, ..., W_xbar, b_xbar] with W in (in, out)
    # and b in (1, out).
    widths = [w.shape[1] for w in params[0::2]]
    n_enc_1, n_enc_2, n_enc_3, n_z, n_dec_1, n_dec_2, n_dec_3, n_out = widths
    assert n_out == n_input

    # Packed lane-dense output slab: widest segment first for best alignment
    # (enc_h1's 128-wide segment lands at lane 0 -> fully unmasked stores).
    segs = [("x_bar", n_input), ("enc_h1", n_enc_1), ("enc_h2", n_enc_2),
            ("enc_h3", n_enc_3), ("z", n_z)]
    seg_off, seg_w = {}, {}
    off = 0
    for name, w in sorted(segs, key=lambda t: -t[1]):
        seg_off[name] = off
        seg_w[name] = w
        off += w
    slab_w = _round_up(off, 128)

    # Batch tile: fat tiles amortize the ~0.35us per-grid-step overhead; cap at
    # ceil(B/2) rows so the grid has >= 2 "parallel" steps whenever B > 8
    # (v7x megacore: shard the batch axis across both TensorCores).
    batch_tile = _round_up(max(batch_tile, 8), 8)
    tb = min(batch_tile, max(_round_up(-(-B // 2), 8), 8))
    Bp = _round_up(B, tb)

    xp = x.astype(jnp.float32)
    if Bp != B:
        xp = jnp.pad(xp, ((0, Bp - B), (0, 0)))

    # bf16 (or f32) weights for the MXU; f32 biases.
    kparams = []
    for w, b in zip(params[0::2], params[1::2]):
        kparams.append(w.astype(weight_dtype))
        kparams.append(b.astype(jnp.float32))

    def batch_spec(feat):
        return pl.BlockSpec((tb, feat), lambda i: (i, 0))

    # Grid-invariant weights/biases: whole-array, VMEM-resident for the entire
    # kernel (loaded once, not pipelined, no double-buffer footprint).
    weight_spec = pl.BlockSpec(memory_space=pltpu.MemorySpace.VMEM)
    in_specs = [batch_spec(n_input)] + [weight_spec] * len(kparams)

    out_shape = jax.ShapeDtypeStruct((Bp, slab_w), jnp.float32)
    out_spec = batch_spec(slab_w)

    # VMEM budget with lane/sublane-PADDED block sizes (what VMEM really holds):
    # resident params + double-buffered I/O tiles + layer-chain working set,
    # clamped to stay comfortably under v7x's 64 MiB physical VMEM.
    param_bytes = sum(_vmem_tile_bytes(p.shape[0], p.shape[1], p.dtype.itemsize)
                      for p in kparams)
    io_bytes = 2 * (_vmem_tile_bytes(tb, n_input, 4)
                    + _vmem_tile_bytes(tb, slab_w, 4))
    work_bytes = 4 * _vmem_tile_bytes(tb, max(widths + [n_input]), 4)
    vmem_limit = param_bytes + io_bytes + work_bytes + (8 << 20)
    vmem_limit = min(max(vmem_limit, 24 << 20), 48 << 20)

    kernel = functools.partial(_ae_kernel, seg_off=seg_off, seg_w=seg_w)
    fn = pl.pallas_call(
        kernel,
        out_shape=out_shape,
        grid_spec=pltpu.PrefetchScalarGridSpec(
            num_scalar_prefetch=0,
            grid=(Bp // tb,),
            in_specs=in_specs,
            out_specs=out_spec,
        ),
        compiler_params=pltpu.CompilerParams(
            dimension_semantics=("parallel",),
            vmem_limit_bytes=vmem_limit,
        ),
    )
    slab = fn(xp, *kparams)

    def seg(name):
        o = seg_off[name]
        return slab[:B, o:o + seg_w[name]]

    return seg("x_bar"), seg("enc_h1"), seg("enc_h2"), seg("enc_h3"), seg("z")


def init_params(key, n_enc_1, n_enc_2, n_enc_3, n_dec_1, n_dec_2, n_dec_3,
                n_input, n_z):
    """Deterministic init; weights stored as (in, out), biases as (1, out)."""
    layer_dims = [
        (n_input, n_enc_1), (n_enc_1, n_enc_2), (n_enc_2, n_enc_3),
        (n_enc_3, n_z),
        (n_z, n_dec_1), (n_dec_1, n_dec_2), (n_dec_2, n_dec_3),
        (n_dec_3, n_input),
    ]
    params = []
    keys = jax.random.split(key, 2 * len(layer_dims))
    for li, (fan_in, fan_out) in enumerate(layer_dims):
        bound = 1.0 / jnp.sqrt(fan_in)  # matches torch.nn.Linear default init range
        w = jax.random.uniform(keys[2 * li], (fan_in, fan_out),
                               minval=-bound, maxval=bound, dtype=jnp.float32)
        b = jax.random.uniform(keys[2 * li + 1], (1, fan_out),
                               minval=-bound, maxval=bound, dtype=jnp.float32)
        params += [w, b]
    return params


def ae_forward_ref(x, params, weight_dtype=jnp.float32):
    """Pure-JAX reference. weight_dtype=bf16 mirrors the kernel's MXU numerics."""
    ws = [w.astype(weight_dtype) for w in params[0::2]]
    bs = [b.astype(jnp.float32) for b in params[1::2]]
    h = x.astype(jnp.float32)
    acts = []
    for w, b, r in zip(ws, bs, _RELU_FLAGS):
        y = jnp.dot(h.astype(w.dtype), w, preferred_element_type=jnp.float32) + b
        if r:
            y = jnp.maximum(y, 0.0)
        acts.append(y)
        h = y
    enc_h1, enc_h2, enc_h3, z, _, _, _, x_bar = acts
    return x_bar, enc_h1, enc_h2, enc_h3, z


if __name__ == "__main__":
    # Small, MXU/VPU-friendly sizes consistent with the AE definition.
    n_input = 64
    n_enc_1, n_enc_2, n_enc_3 = 128, 64, 32
    n_z = 16
    n_dec_1, n_dec_2, n_dec_3 = 32, 64, 128

    key = jax.random.PRNGKey(0)
    kx, kp = jax.random.split(key)
    params = init_params(kp, n_enc_1, n_enc_2, n_enc_3,
                         n_dec_1, n_dec_2, n_dec_3, n_input, n_z)

    # Configurations cover: tiny batch split into 2 grid steps (16), padded
    # batch (10), and a padded 2-step grid with fat tiles (300 -> 2x152 rows).
    for batch in (16, 10, 300):
        x = jax.random.normal(jax.random.fold_in(kx, batch), (batch, n_input),
                              dtype=jnp.float32)
        outs = jax.block_until_ready(ae_forward(x, params, batch_tile=512))

        ref_bf16 = ae_forward_ref(x, params, weight_dtype=jnp.bfloat16)
        ref_f32 = ae_forward_ref(x, params, weight_dtype=jnp.float32)
        for o, rb, rf in zip(outs, ref_bf16, ref_f32):
            assert o.shape == rb.shape and o.dtype == jnp.float32
            assert jnp.allclose(o, rb, atol=1e-3, rtol=1e-3), \
                "mismatch vs bf16-matched reference"
            assert jnp.allclose(o, rf, atol=5e-2, rtol=5e-2), \
                "mismatch vs f32 reference"

    print("KERNEL_OK")
</pallas_src>

<mosaic_0001>
module attributes {stable_mosaic.version = 11 : i64} {
  func.func @_ae_kernel(%arg0: i32, %arg1: memref<8x64xf32, #tpu.memory_space<vmem>>, %arg2: memref<64x128xbf16, #tpu.memory_space<vmem>>, %arg3: memref<1x128xf32, #tpu.memory_space<vmem>>, %arg4: memref<128x64xbf16, #tpu.memory_space<vmem>>, %arg5: memref<1x64xf32, #tpu.memory_space<vmem>>, %arg6: memref<64x32xbf16, #tpu.memory_space<vmem>>, %arg7: memref<1x32xf32, #tpu.memory_space<vmem>>, %arg8: memref<32x16xbf16, #tpu.memory_space<vmem>>, %arg9: memref<1x16xf32, #tpu.memory_space<vmem>>, %arg10: memref<16x32xbf16, #tpu.memory_space<vmem>>, %arg11: memref<1x32xf32, #tpu.memory_space<vmem>>, %arg12: memref<32x64xbf16, #tpu.memory_space<vmem>>, %arg13: memref<1x64xf32, #tpu.memory_space<vmem>>, %arg14: memref<64x128xbf16, #tpu.memory_space<vmem>>, %arg15: memref<1x128xf32, #tpu.memory_space<vmem>>, %arg16: memref<128x64xbf16, #tpu.memory_space<vmem>>, %arg17: memref<1x64xf32, #tpu.memory_space<vmem>>, %arg18: memref<8x384xf32, #tpu.memory_space<vmem>>) attributes {dimension_semantics = [#tpu.dimension_semantics<parallel>], iteration_bounds = array<i64: 2>, scalar_prefetch = 0 : i64, scratch_operands = 0 : i64, tpu.core_type = #tpu.core_type<tc>, window_params = [{transform_indices = @transform_0, window_bounds = array<i64: 8, 64>}, {pipeline_mode = #tpu.pipeline_mode<synchronous>, transform_indices = @transform_1, window_bounds = array<i64: 64, 128>}, {pipeline_mode = #tpu.pipeline_mode<synchronous>, transform_indices = @transform_2, window_bounds = array<i64: 1, 128>}, {pipeline_mode = #tpu.pipeline_mode<synchronous>, transform_indices = @transform_3, window_bounds = array<i64: 128, 64>}, {pipeline_mode = #tpu.pipeline_mode<synchronous>, transform_indices = @transform_4, window_bounds = array<i64: 1, 64>}, {pipeline_mode = #tpu.pipeline_mode<synchronous>, transform_indices = @transform_5, window_bounds = array<i64: 64, 32>}, {pipeline_mode = #tpu.pipeline_mode<synchronous>, transform_indices = @transform_6, window_bounds = array<i64: 1, 32>}, {pipeline_mode = #tpu.pipeline_mode<synchronous>, transform_indices = @transform_7, window_bounds = array<i64: 32, 16>}, {pipeline_mode = #tpu.pipeline_mode<synchronous>, transform_indices = @transform_8, window_bounds = array<i64: 1, 16>}, {pipeline_mode = #tpu.pipeline_mode<synchronous>, transform_indices = @transform_9, window_bounds = array<i64: 16, 32>}, {pipeline_mode = #tpu.pipeline_mode<synchronous>, transform_indices = @transform_10, window_bounds = array<i64: 1, 32>}, {pipeline_mode = #tpu.pipeline_mode<synchronous>, transform_indices = @transform_11, window_bounds = array<i64: 32, 64>}, {pipeline_mode = #tpu.pipeline_mode<synchronous>, transform_indices = @transform_12, window_bounds = array<i64: 1, 64>}, {pipeline_mode = #tpu.pipeline_mode<synchronous>, transform_indices = @transform_13, window_bounds = array<i64: 64, 128>}, {pipeline_mode = #tpu.pipeline_mode<synchronous>, transform_indices = @transform_14, window_bounds = array<i64: 1, 128>}, {pipeline_mode = #tpu.pipeline_mode<synchronous>, transform_indices = @transform_15, window_bounds = array<i64: 128, 64>}, {pipeline_mode = #tpu.pipeline_mode<synchronous>, transform_indices = @transform_16, window_bounds = array<i64: 1, 64>}, {transform_indices = @transform_17, window_bounds = array<i64: 8, 384>}]} {
    %c0 = arith.constant 0 : index
    %c0_0 = arith.constant 0 : index
    %0 = vector.load %arg1[%c0, %c0_0] : memref<8x64xf32, #tpu.memory_space<vmem>>, vector<8x64xf32>
    %1 = arith.truncf %0 : vector<8x64xf32> to vector<8x64xbf16>
    %c0_1 = arith.constant 0 : index
    %c0_2 = arith.constant 0 : index
    %2 = vector.load %arg2[%c0_1, %c0_2] : memref<64x128xbf16, #tpu.memory_space<vmem>>, vector<64x128xbf16>
    %cst = arith.constant dense<0.000000e+00> : vector<8x128xf32>
    %3 = tpu.matmul %1, %2, %cst {dimension_numbers = #tpu.dot_dimension_numbers<[1], [0], [0], [1], [0, 0, 1, 1], [], []>} : vector<8x64xbf16>, vector<64x128xbf16>, vector<8x128xf32> -> vector<8x128xf32>
    %c0_3 = arith.constant 0 : index
    %c0_4 = arith.constant 0 : index
    %4 = vector.load %arg3[%c0_3, %c0_4] : memref<1x128xf32, #tpu.memory_space<vmem>>, vector<1x128xf32>
    %5 = vector.broadcast %4 : vector<1x128xf32> to vector<8x128xf32>
    %6 = arith.addf %3, %5 : vector<8x128xf32>
    %cst_5 = arith.constant 0.000000e+00 : f32
    %7 = vector.broadcast %cst_5 : f32 to vector<8x128xf32>
    %8 = arith.maximumf %6, %7 : vector<8x128xf32>
    %c0_6 = arith.constant 0 : index
    %c0_7 = arith.constant 0 : index
    %9 = vector.load %arg18[%c0_6, %c0_7] : memref<8x384xf32, #tpu.memory_space<vmem>>, vector<8x128xf32>
    tpu.vector_store %arg18[%c0_6, %c0_7], %8 {strides = array<i32>} : memref<8x384xf32, #tpu.memory_space<vmem>>, vector<8x128xf32>,
    %10 = arith.truncf %8 : vector<8x128xf32> to vector<8x128xbf16>
    %c0_8 = arith.constant 0 : index
    %c0_9 = arith.constant 0 : index
    %11 = vector.load %arg4[%c0_8, %c0_9] : memref<128x64xbf16, #tpu.memory_space<vmem>>, vector<128x64xbf16>
    %cst_10 = arith.constant dense<0.000000e+00> : vector<8x64xf32>
    %12 = tpu.matmul %10, %11, %cst_10 {dimension_numbers = #tpu.dot_dimension_numbers<[1], [0], [0], [1], [0, 0, 1, 1], [], []>} : vector<8x128xbf16>, vector<128x64xbf16>, vector<8x64xf32> -> vector<8x64xf32>
    %c0_11 = arith.constant 0 : index
    %c0_12 = arith.constant 0 : index
    %13 = vector.load %arg5[%c0_11, %c0_12] : memref<1x64xf32, #tpu.memory_space<vmem>>, vector<1x64xf32>
    %14 = vector.broadcast %13 : vector<1x64xf32> to vector<8x64xf32>
    %15 = arith.addf %12, %14 : vector<8x64xf32>
    %cst_13 = arith.constant 0.000000e+00 : f32
    %16 = vector.broadcast %cst_13 : f32 to vector<8x64xf32>
    %17 = arith.maximumf %15, %16 : vector<8x64xf32>
    %c0_14 = arith.constant 0 : index
    %c192 = arith.constant 192 : index
    %18 = vector.load %arg18[%c0_14, %c192] : memref<8x384xf32, #tpu.memory_space<vmem>>, vector<8x64xf32>
    tpu.vector_store %arg18[%c0_14, %c192], %17 {strides = array<i32>} : memref<8x384xf32, #tpu.memory_space<vmem>>, vector<8x64xf32>,
    %19 = arith.truncf %17 : vector<8x64xf32> to vector<8x64xbf16>
    %c0_15 = arith.constant 0 : index
    %c0_16 = arith.constant 0 : index
    %20 = vector.load %arg6[%c0_15, %c0_16] : memref<64x32xbf16, #tpu.memory_space<vmem>>, vector<64x32xbf16>
    %cst_17 = arith.constant dense<0.000000e+00> : vector<8x32xf32>
    %21 = tpu.matmul %19, %20, %cst_17 {dimension_numbers = #tpu.dot_dimension_numbers<[1], [0], [0], [1], [0, 0, 1, 1], [], []>} : vector<8x64xbf16>, vector<64x32xbf16>, vector<8x32xf32> -> vector<8x32xf32>
    %c0_18 = arith.constant 0 : index
    %c0_19 = arith.constant 0 : index
    %22 = vector.load %arg7[%c0_18, %c0_19] : memref<1x32xf32, #tpu.memory_space<vmem>>, vector<1x32xf32>
    %23 = vector.broadcast %22 : vector<1x32xf32> to vector<8x32xf32>
    %24 = arith.addf %21, %23 : vector<8x32xf32>
    %cst_20 = arith.constant 0.000000e+00 : f32
    %25 = vector.broadcast %cst_20 : f32 to vector<8x32xf32>
    %26 = arith.maximumf %24, %25 : vector<8x32xf32>
    %c0_21 = arith.constant 0 : index
    %c256 = arith.constant 256 : index
    %27 = vector.load %arg18[%c0_21, %c256] : memref<8x384xf32, #tpu.memory_space<vmem>>, vector<8x32xf32>
    tpu.vector_store %arg18[%c0_21, %c256], %26 {strides = array<i32>} : memref<8x384xf32, #tpu.memory_space<vmem>>, vector<8x32xf32>,
    %28 = arith.truncf %26 : vector<8x32xf32> to vector<8x32xbf16>
    %c0_22 = arith.constant 0 : index
    %c0_23 = arith.constant 0 : index
    %29 = vector.load %arg8[%c0_22, %c0_23] : memref<32x16xbf16, #tpu.memory_space<vmem>>, vector<32x16xbf16>
    %cst_24 = arith.constant dense<0.000000e+00> : vector<8x16xf32>
    %30 = tpu.matmul %28, %29, %cst_24 {dimension_numbers = #tpu.dot_dimension_numbers<[1], [0], [0], [1], [0, 0, 1, 1], [], []>} : vector<8x32xbf16>, vector<32x16xbf16>, vector<8x16xf32> -> vector<8x16xf32>
    %c0_25 = arith.constant 0 : index
    %c0_26 = arith.constant 0 : index
    %31 = vector.load %arg9[%c0_25, %c0_26] : memref<1x16xf32, #tpu.memory_space<vmem>>, vector<1x16xf32>
    %32 = vector.broadcast %31 : vector<1x16xf32> to vector<8x16xf32>
    %33 = arith.addf %30, %32 : vector<8x16xf32>
    %c0_27 = arith.constant 0 : index
    %c288 = arith.constant 288 : index
    %34 = vector.load %arg18[%c0_27, %c288] : memref<8x384xf32, #tpu.memory_space<vmem>>, vector<8x16xf32>
    tpu.vector_store %arg18[%c0_27, %c288], %33 {strides = array<i32>} : memref<8x384xf32, #tpu.memory_space<vmem>>, vector<8x16xf32>,
    %35 = arith.truncf %33 : vector<8x16xf32> to vector<8x16xbf16>
    %c0_28 = arith.constant 0 : index
    %c0_29 = arith.constant 0 : index
    %36 = vector.load %arg10[%c0_28, %c0_29] : memref<16x32xbf16, #tpu.memory_space<vmem>>, vector<16x32xbf16>
    %cst_30 = arith.constant dense<0.000000e+00> : vector<8x32xf32>
    %37 = tpu.matmul %35, %36, %cst_30 {dimension_numbers = #tpu.dot_dimension_numbers<[1], [0], [0], [1], [0, 0, 1, 1], [], []>} : vector<8x16xbf16>, vector<16x32xbf16>, vector<8x32xf32> -> vector<8x32xf32>
    %c0_31 = arith.constant 0 : index
    %c0_32 = arith.constant 0 : index
    %38 = vector.load %arg11[%c0_31, %c0_32] : memref<1x32xf32, #tpu.memory_space<vmem>>, vector<1x32xf32>
    %39 = vector.broadcast %38 : vector<1x32xf32> to vector<8x32xf32>
    %40 = arith.addf %37, %39 : vector<8x32xf32>
    %cst_33 = arith.constant 0.000000e+00 : f32
    %41 = vector.broadcast %cst_33 : f32 to vector<8x32xf32>
    %42 = arith.maximumf %40, %41 : vector<8x32xf32>
    %43 = arith.truncf %42 : vector<8x32xf32> to vector<8x32xbf16>
    %c0_34 = arith.constant 0 : index
    %c0_35 = arith.constant 0 : index
    %44 = vector.load %arg12[%c0_34, %c0_35] : memref<32x64xbf16, #tpu.memory_space<vmem>>, vector<32x64xbf16>
    %cst_36 = arith.constant dense<0.000000e+00> : vector<8x64xf32>
    %45 = tpu.matmul %43, %44, %cst_36 {dimension_numbers = #tpu.dot_dimension_numbers<[1], [0], [0], [1], [0, 0, 1, 1], [], []>} : vector<8x32xbf16>, vector<32x64xbf16>, vector<8x64xf32> -> vector<8x64xf32>
    %c0_37 = arith.constant 0 : index
    %c0_38 = arith.constant 0 : index
    %46 = vector.load %arg13[%c0_37, %c0_38] : memref<1x64xf32, #tpu.memory_space<vmem>>, vector<1x64xf32>
    %47 = vector.broadcast %46 : vector<1x64xf32> to vector<8x64xf32>
    %48 = arith.addf %45, %47 : vector<8x64xf32>
    %cst_39 = arith.constant 0.000000e+00 : f32
    %49 = vector.broadcast %cst_39 : f32 to vector<8x64xf32>
    %50 = arith.maximumf %48, %49 : vector<8x64xf32>
    %51 = arith.truncf %50 : vector<8x64xf32> to vector<8x64xbf16>
    %c0_40 = arith.constant 0 : index
    %c0_41 = arith.constant 0 : index
    %52 = vector.load %arg14[%c0_40, %c0_41] : memref<64x128xbf16, #tpu.memory_space<vmem>>, vector<64x128xbf16>
    %cst_42 = arith.constant dense<0.000000e+00> : vector<8x128xf32>
    %53 = tpu.matmul %51, %52, %cst_42 {dimension_numbers = #tpu.dot_dimension_numbers<[1], [0], [0], [1], [0, 0, 1, 1], [], []>} : vector<8x64xbf16>, vector<64x128xbf16>, vector<8x128xf32> -> vector<8x128xf32>
    %c0_43 = arith.constant 0 : index
    %c0_44 = arith.constant 0 : index
    %54 = vector.load %arg15[%c0_43, %c0_44] : memref<1x128xf32, #tpu.memory_space<vmem>>, vector<1x128xf32>
    %55 = vector.broadcast %54 : vector<1x128xf32> to vector<8x128xf32>
    %56 = arith.addf %53, %55 : vector<8x128xf32>
    %cst_45 = arith.constant 0.000000e+00 : f32
    %57 = vector.broadcast %cst_45 : f32 to vector<8x128xf32>
    %58 = arith.maximumf %56, %57 : vector<8x128xf32>
    %59 = arith.truncf %58 : vector<8x128xf32> to vector<8x128xbf16>
    %c0_46 = arith.constant 0 : index
    %c0_47 = arith.constant 0 : index
    %60 = vector.load %arg16[%c0_46, %c0_47] : memref<128x64xbf16, #tpu.memory_space<vmem>>, vector<128x64xbf16>
    %cst_48 = arith.constant dense<0.000000e+00> : vector<8x64xf32>
    %61 = tpu.matmul %59, %60, %cst_48 {dimension_numbers = #tpu.dot_dimension_numbers<[1], [0], [0], [1], [0, 0, 1, 1], [], []>} : vector<8x128xbf16>, vector<128x64xbf16>, vector<8x64xf32> -> vector<8x64xf32>
    %c0_49 = arith.constant 0 : index
    %c0_50 = arith.constant 0 : index
    %62 = vector.load %arg17[%c0_49, %c0_50] : memref<1x64xf32, #tpu.memory_space<vmem>>, vector<1x64xf32>
    %63 = vector.broadcast %62 : vector<1x64xf32> to vector<8x64xf32>
    %64 = arith.addf %61, %63 : vector<8x64xf32>
    %c0_51 = arith.constant 0 : index
    %c128 = arith.constant 128 : index
    %65 = vector.load %arg18[%c0_51, %c128] : memref<8x384xf32, #tpu.memory_space<vmem>>, vector<8x64xf32>
    tpu.vector_store %arg18[%c0_51, %c128], %64 {strides = array<i32>} : memref<8x384xf32, #tpu.memory_space<vmem>>, vector<8x64xf32>,
    return
  }
  func.func @transform_0(%arg0: i32) -> (i32, i32) {
    %c0_i32 = arith.constant 0 : i32
    %c0_i32_0 = arith.constant 0 : i32
    return %arg0, %c0_i32 : i32, i32
  }
  func.func @transform_1(%arg0: i32) -> (i32, i32) {
    %c0_i32 = arith.constant 0 : i32
    %c0_i32_0 = arith.constant 0 : i32
    %c0_i32_1 = arith.constant 0 : i32
    return %c0_i32, %c0_i32_0 : i32, i32
  }
  func.func @transform_2(%arg0: i32) -> (i32, i32) {
    %c0_i32 = arith.constant 0 : i32
    %c0_i32_0 = arith.constant 0 : i32
    %c0_i32_1 = arith.constant 0 : i32
    return %c0_i32, %c0_i32_0 : i32, i32
  }
  func.func @transform_3(%arg0: i32) -> (i32, i32) {
    %c0_i32 = arith.constant 0 : i32
    %c0_i32_0 = arith.constant 0 : i32
    %c0_i32_1 = arith.constant 0 : i32
    return %c0_i32, %c0_i32_0 : i32, i32
  }
  func.func @transform_4(%arg0: i32) -> (i32, i32) {
    %c0_i32 = arith.constant 0 : i32
    %c0_i32_0 = arith.constant 0 : i32
    %c0_i32_1 = arith.constant 0 : i32
    return %c0_i32, %c0_i32_0 : i32, i32
  }
  func.func @transform_5(%arg0: i32) -> (i32, i32) {
    %c0_i32 = arith.constant 0 : i32
    %c0_i32_0 = arith.constant 0 : i32
    %c0_i32_1 = arith.constant 0 : i32
    return %c0_i32, %c0_i32_0 : i32, i32
  }
  func.func @transform_6(%arg0: i32) -> (i32, i32) {
    %c0_i32 = arith.constant 0 : i32
    %c0_i32_0 = arith.constant 0 : i32
    %c0_i32_1 = arith.constant 0 : i32
    return %c0_i32, %c0_i32_0 : i32, i32
  }
  func.func @transform_7(%arg0: i32) -> (i32, i32) {
    %c0_i32 = arith.constant 0 : i32
    %c0_i32_0 = arith.constant 0 : i32
    %c0_i32_1 = arith.constant 0 : i32
    return %c0_i32, %c0_i32_0 : i32, i32
  }
  func.func @transform_8(%arg0: i32) -> (i32, i32) {
    %c0_i32 = arith.constant 0 : i32
    %c0_i32_0 = arith.constant 0 : i32
    %c0_i32_1 = arith.constant 0 : i32
    return %c0_i32, %c0_i32_0 : i32, i32
  }
  func.func @transform_9(%arg0: i32) -> (i32, i32) {
    %c0_i32 = arith.constant 0 : i32
    %c0_i32_0 = arith.constant 0 : i32
    %c0_i32_1 = arith.constant 0 : i32
    return %c0_i32, %c0_i32_0 : i32, i32
  }
  func.func @transform_10(%arg0: i32) -> (i32, i32) {
    %c0_i32 = arith.constant 0 : i32
    %c0_i32_0 = arith.constant 0 : i32
    %c0_i32_1 = arith.constant 0 : i32
    return %c0_i32, %c0_i32_0 : i32, i32
  }
  func.func @transform_11(%arg0: i32) -> (i32, i32) {
    %c0_i32 = arith.constant 0 : i32
    %c0_i32_0 = arith.constant 0 : i32
    %c0_i32_1 = arith.constant 0 : i32
    return %c0_i32, %c0_i32_0 : i32, i32
  }
  func.func @transform_12(%arg0: i32) -> (i32, i32) {
    %c0_i32 = arith.constant 0 : i32
    %c0_i32_0 = arith.constant 0 : i32
    %c0_i32_1 = arith.constant 0 : i32
    return %c0_i32, %c0_i32_0 : i32, i32
  }
  func.func @transform_13(%arg0: i32) -> (i32, i32) {
    %c0_i32 = arith.constant 0 : i32
    %c0_i32_0 = arith.constant 0 : i32
    %c0_i32_1 = arith.constant 0 : i32
    return %c0_i32, %c0_i32_0 : i32, i32
  }
  func.func @transform_14(%arg0: i32) -> (i32, i32) {
    %c0_i32 = arith.constant 0 : i32
    %c0_i32_0 = arith.constant 0 : i32
    %c0_i32_1 = arith.constant 0 : i32
    return %c0_i32, %c0_i32_0 : i32, i32
  }
  func.func @transform_15(%arg0: i32) -> (i32, i32) {
    %c0_i32 = arith.constant 0 : i32
    %c0_i32_0 = arith.constant 0 : i32
    %c0_i32_1 = arith.constant 0 : i32
    return %c0_i32, %c0_i32_0 : i32, i32
  }
  func.func @transform_16(%arg0: i32) -> (i32, i32) {
    %c0_i32 = arith.constant 0 : i32
    %c0_i32_0 = arith.constant 0 : i32
    %c0_i32_1 = arith.constant 0 : i32
    return %c0_i32, %c0_i32_0 : i32, i32
  }
  func.func @transform_17(%arg0: i32) -> (i32, i32) {
    %c0_i32 = arith.constant 0 : i32
    %c0_i32_0 = arith.constant 0 : i32
    return %arg0, %c0_i32 : i32, i32
  }
}

</mosaic_0001>

<bundles_post_ra>
// kernel: tpu_custom_call.1
= control target key start
LH: loop header
LB: loop body
LE: loop exit
PB: predicated region body
PF: predicated region fallthrough
CT: control target
= control target key end

     0   :  { %s2032_s0 = inlined_call_operand.vmem [shape: f32[16,64], index: 0, kind: input, shape index: {}]   ;;  %s2033_s1 = inlined_call_operand.vmem [shape: bf16[64,128], index: 1, kind: input, shape index: {}]   ;;  %s2034_s2 = inlined_call_operand.vmem [shape: f32[1,128], index: 2, kind: input, shape index: {}]   ;;  %s2035_s3 = inlined_call_operand.vmem [shape: bf16[128,64], index: 3, kind: input, shape index: {}]   ;;  %s2036_s4 = inlined_call_operand.vmem [shape: f32[1,64], index: 4, kind: input, shape index: {}]   ;;  %s2037_s5 = inlined_call_operand.vmem [shape: bf16[64,32], index: 5, kind: input, shape index: {}]   ;;  %s2038_s6 = inlined_call_operand.vmem [shape: f32[1,32], index: 6, kind: input, shape index: {}]   ;;  %s2039_s7 = inlined_call_operand.vmem [shape: bf16[32,16], index: 7, kind: input, shape index: {}]   ;;  %s2040_s8 = inlined_call_operand.vmem [shape: f32[1,16], index: 8, kind: input, shape index: {}]   ;;  %s2041_s9 = inlined_call_operand.vmem [shape: bf16[16,32], index: 9, kind: input, shape index: {}]   ;;  %s2042_s10 = inlined_call_operand.vmem [shape: f32[1,32], index: 10, kind: input, shape index: {}]   ;;  %s2043_s11 = inlined_call_operand.vmem [shape: bf16[32,64], index: 11, kind: input, shape index: {}]   ;;  %s2044_s12 = inlined_call_operand.vmem [shape: f32[1,64], index: 12, kind: input, shape index: {}]   ;;  %s2045_s13 = inlined_call_operand.vmem [shape: bf16[64,128], index: 13, kind: input, shape index: {}]   ;;  %s2046_s14 = inlined_call_operand.vmem [shape: f32[1,128], index: 14, kind: input, shape index: {}]   ;;  %s2047_s15 = inlined_call_operand.vmem [shape: bf16[128,64], index: 15, kind: input, shape index: {}]   ;;  %s2048_s16 = inlined_call_operand.vmem [shape: f32[1,64], index: 16, kind: input, shape index: {}]   ;;  %s2049_s17 = inlined_call_operand.hbm [shape: f32[16,384], index: 17, kind: output, shape index: {}]  }
   0x1   :  { %2058 = sst [smem:[#allocation11_spill]] %s2032_s0 }
   0x2   :  { %2059 = sst [smem:[#allocation12_spill]] %s2033_s1 }
   0x3   :  { %2060 = sst [smem:[#allocation13_spill]] %s2049_s17 }
   0x4   :  { %22 = vsyncpa [#allocation3], 0 }
   0x5   :  { %24 = vsyncpa [#allocation3 + $0x1], 0  ;;  %s1741_s24 = smov 0   ;;  %s1743_s25 = smov 0  }
   0x6   :  { %s1745_s26 = smov 0   ;;  %s1747_s27 = smov 0  }
   0x7 LB: > { %2061 = sst [smem:[#allocation5_spill]] %s1632_s24  ;;  %s1762_s28 = sadd.s32 4294967295, %s1644_s27   ;;  %s1644_s27 = sphi %s1747_s27, %s2075_s27   ;;  %s1640_s26 = sphi %s1745_s26, %s2077_s26   ;;  %s1636_s25 = sphi %s1743_s25, %s2079_s25   ;;  %s1632_s24 = sphi %s1741_s24, %s2078_s24  }
   0x8   : > { %2062 = sst [smem:[#allocation6_spill]] %s1640_s26  ;;  %s1310_s29 = sadd.s32 4294967294, %s1644_s27  }
   0x9   : > { %2063 = sst [smem:[#allocation7_spill]] %s1644_s27  ;;  %s1766_s0 = sadd.s32 1, %s1644_s27  }
   0xa   : > { %2064 = sst [smem:[#allocation8_spill]] %s1766_s0  ;;  %s399_s30 = sadd.s32 1, %s1640_s26 }
   0xb   : > { %s396_s18 = ssub.s32 %s1644_s27, %s1766_s0  ;;  %p409_p0 = scmp.ne.s32.totalorder %s1640_s26, %s1636_s25 }
   0xc   : > { %p397_p1 = scmp.eq.s32.totalorder %s396_s18, 0  ;;  %p410_p2 = scmp.eq.s32.totalorder %s1762_s28, 1 }
   0xd   : > { %p415_p3 = scmp.ne.s32.totalorder %s1636_s25, %s1632_s24  ;;  %p416_p4 = scmp.eq.s32.totalorder %s1310_s29, 1 }
   0xe   : > { %s1777_s19 = scalar_select %p397_p1, %s1640_s26, %s399_s30  }
   0xf   : > { %p1779_p5 = por %p410_p2, %p409_p0  ;;  %p1783_p6 = por %p416_p4, %p415_p3 }
  0x10   : > { %2065 = sst [smem:[#allocation9_spill]] %s1777_s19  ;;  %p1313_p7 = scmp.ge.s32.totalorder %s1644_s27, 1 }
  0x11   : > { %s2067_s20 = scalar_select %p1783_p6, 1, 0 }
  0x12   : > { %p489_p8 = scmp.lt.s32.totalorder %s1644_s27, 3 }
  0x13   : > { %2068 = sst [smem:[#allocation10_spill]] %s2067_s20 }
  0x14   : > { %p490_p9 = pnand %p1313_p7, %p489_p8 }
  0x15   : > { %s2069_s23 = sld [smem:[#allocation12_spill]] (!%p490_p9)  ;;  %v1646_v1 = vmov (!%p490_p9), 0.0   ;;  %vm1647_vm0 = vmmov (!%p490_p9), 0   ;;  %p540_p10 = scmp.lt.s32.totalorder (!%p490_p9), %s1762_s28, 1  ;;  %vm586_vm1 = vcmask (!%p490_p9), 523264   ;;  %v1553_v6 = vld [vmem:[%s2035_s3] sm:$0xff] (!%p490_p9)  }
  0x16   : > { %493 = sbr.rel (%p490_p9) target bundleno = 1795 (0x703), region = 88  ;;  %1406 = vmatprep.subr.bf16.mxu1 (!%p490_p9), %v1646_v1  ;;  %1438 = vmatprep.subr.bf16.mxu0 (!%p490_p9), %v1646_v1  ;;  %s2070_s26 = sld [smem:[#allocation11_spill]] (!%p490_p9)  ;;  %v1554_v8 = vld [vmem:[%s2035_s3 + $0x8] sm:$0xff] (!%p490_p9)   ;;  %v1555_v9 = vld [vmem:[%s2035_s3 + $0x10] sm:$0xff] (!%p490_p9)   ;;  %v1556_v10 = vld [vmem:[%s2035_s3 + $0x18] sm:$0xff] (!%p490_p9)   ;;  %vm749_vm2 = vcmask (!%p490_p9), 1048064  }
  0x17   : > { %1414 = vmatprep.mubr.msk.bf16.mxu1 (!%p490_p9), %vm1647_vm0, %v1646_v1  ;;  %1446 = vmatprep.mubr.msk.bf16.mxu0 (!%p490_p9), %vm1647_vm0, %v1646_v1  ;;  %v1557_v11 = vld [vmem:[%s2035_s3 + $0x20] sm:$0xff] (!%p490_p9)   ;;  %v1558_v12 = vld [vmem:[%s2035_s3 + $0x28] sm:$0xff] (!%p490_p9)   ;;  %v1559_v13 = vld [vmem:[%s2035_s3 + $0x30] sm:$0xff] (!%p490_p9)   ;;  %s1648_s20 = smov (!%p490_p9), 64   ;;  %vm835_vm3 = vcmask (!%p490_p9), 261120   ;;  %vm926_vm4 = vcmask (!%p490_p9), 130048  }
  0x18   : > { %v1560_v14 = vld [vmem:[%s2035_s3 + $0x38] sm:$0xff] (!%p490_p9)   ;;  %v1561_v15 = vld [vmem:[%s2037_s5] sm:$0xff] (!%p490_p9)   ;;  %v1562_v16 = vld [vmem:[%s2037_s5 + $0x8] sm:$0xff] (!%p490_p9)   ;;  %s1649_s22 = smov (!%p490_p9), 32   ;;  %vm908_vm5 = vcmask (!%p490_p9), 392448   ;;  %s1505_s21 = smul.u32 (!%p490_p9), 384, %s1762_s28 }
  0x19   : > { %1439 = vmatpush3.bf16.msra.mxu0 (!%p490_p9), %v1561_v15  ;;  %v1315_v17 = vld [vmem:[%s2034_s2] ss:$0 sm:$0xff] (!%p490_p9)  ;;  %v1563_v25 = vld [vmem:[%s2037_s5 + $0x10] sm:$0xff] (!%p490_p9)   ;;  %v1564_v26 = vld [vmem:[%s2037_s5 + $0x18] sm:$0xff] (!%p490_p9)  }
  0x1a   : > { %1440 = vmatprep.subr.bf16.mxu0 (!%p490_p9), %v1646_v1  ;;  %v1321_v27 = vld [vmem:[%s2036_s4] ss:$0 sm:$0xff] (!%p490_p9)  ;;  %v1566_v36 = vld [vmem:[%s2039_s7 + $0x8] sm:$0xff] (!%p490_p9)  }
  0x1b   : > { %v1549_v0 = vld [vmem:[%s2069_s23] sm:$0xff] (!%p490_p9)   ;;  %v1550_v2 = vld [vmem:[%s2069_s23 + $0x8] sm:$0xff] (!%p490_p9)   ;;  %v1551_v3 = vld [vmem:[%s2069_s23 + $0x10] sm:$0xff] (!%p490_p9)  }
  0x1c   : > { %1407 = vmatpush3.bf16.msra.mxu1 (!%p490_p9), %v1549_v0  ;;  %v1552_v4 = vld [vmem:[%s2069_s23 + $0x18] sm:$0xff] (!%p490_p9)   ;;  %v1565_v34 = vld [vmem:[%s2039_s7] sm:$0xff] (!%p490_p9)   ;;  %v1569_v55 = vld [vmem:[%s2043_s11 + $0x8] sm:$0xff] (!%p490_p9)  }
  0x1d   : > { %1408 = vmatprep.subr.bf16.mxu1 %v1646_v1  ;;  %s541_s18 = scalar_select %p540_p10, %s1762_s28, 1  ;;  %1441 = vmatpush3.bf16.msra.mxu0 %v1562_v16  ;;  %v1567_v37 = vld [vmem:[%s2041_s9] sm:$0xff]   ;;  %v1571_v57 = vld [vmem:[%s2045_s13 + $0x8] sm:$0xff]  }
  0x1e   : > { %1442 = vmatprep.subr.bf16.mxu0 %v1646_v1  ;;  %v1330_v39 = vld [vmem:[%s2038_s6] ss:$0 sm:$0xff] }
  0x1f   : > { %s1314_s19 = sshll.u32 %s541_s18, 3  ;;  %v1568_v47 = vld [vmem:[%s2043_s11] sm:$0xff]   ;;  %s1650_s18 = smov [#allocation2]  }
  0x20   : > { %1409 = vmatpush3.bf16.msra.mxu1 %v1550_v2  ;;  %s543_s0 = scalar_lea.vmem %s2070_s26, %s1314_s19  ;;  %v1336_v48 = vld [vmem:[%s2040_s8] ss:$0 sm:$0xff]  ;;  %s1586_s24 = sshll.u32 %s1650_s18, 4  ;;  %s1587_s24 = int_to_ptr.vmem [resolvable:$false] %s1586_s24 }
  0x21   : > { %1410 = vmatprep.subr.bf16.mxu1 %v1646_v1  ;;  %v545_v5 = vld [vmem:[%s543_s0] sm:$0xff]  ;;  %s537_s0 = sand.u32 1, %s1636_s25   ;;  %1443 = vmatpush3.bf16.msra.mxu0 %v1563_v25 }
  0x22   : > { %v546_v7 = vpack.c.bf16 %v545_v5, %v545_v5  ;;  %s1504_s19 = smul.u32 24, %s537_s0  ;;  %1444 = vmatprep.subr.bf16.mxu0 %v1646_v1  ;;  %v1570_v56 = vld [vmem:[%s2045_s13] sm:$0xff]   ;;  %v1573_v5 = vld [vmem:[%s2045_s13 + $0x18] sm:$0xff]   ;;  %s1237_s28 = scalar_lea.sflag [#allocation3], %s537_s0 }
  0x23   : > { %v1340_v59 = vld [vmem:[%s2042_s10] ss:$0 sm:$0xff] }
  0x24   : > { %1411 = vmatpush3.bf16.msra.mxu1 %v1551_v3  ;;  %s1865_s29 = scalar_lea.vmem [#allocation2], %s1504_s19 }
  0x25   : > { %1412 = vmatprep.subr.bf16.mxu1 %v1646_v1  ;;  %1445 = vmatpush3.bf16.msra.mxu0 %v1564_v26  ;;  %s1251_s17 = sshll.u32 %s1865_s29, 4  ;;  %s1988_s17 = int_to_ptr.vmem [resolvable:$true] %s1251_s17 }
  0x26   : > { %1450 = vmatprep.subr.bf16.mxu0 %v1646_v1  ;;  %s1582_s30 = scalar_lea.vmem %s1988_s17, 384  ;;  %p1589_p0 = scmp.lt.s32.totalorder %s1988_s17, %s1587_s24 }
  0x27   : > { %p1583_p11 = scmp.ne.s32.totalorder %s1988_s17, %s1582_s30 }
  0x28   : > { %1413 = vmatpush3.bf16.msra.mxu1 %v1552_v4  ;;  %v1572_v4 = vld [vmem:[%s2045_s13 + $0x10] sm:$0xff]  }
  0x29   : > { %1418 = vmatprep.subr.bf16.mxu1 %v1646_v1  ;;  %p1584_p12 = pnand %p1583_p11, %p1779_p5 }
  0x2b   : > { %1415 = vmatmul.mubr.msk.bf16.vlgmr.msra.gmra.mrb[0].mxu1 %vm586_vm1, %v546_v7  ;;  %v1575_v7 = vld [vmem:[%s2047_s15 + $0x8] sm:$0xff]   ;;  %p1585_p13 = pneg %p1584_p12 }
  0x2c   : > { %1419 = vmatpush3.bf16.msra.mxu1 %v1553_v6  ;;  %1434 = vmatprep.mubr.msk.bf16.mxu1 %vm1647_vm0, %v1646_v1  ;;  %v1574_v6 = vld [vmem:[%s2047_s15] sm:$0xff]  }
  0x2d   : > { %1420 = vmatprep.subr.bf16.mxu1 %v1646_v1 }
  0x30   : > { %1421 = vmatpush3.bf16.msra.mxu1 %v1554_v8  ;;  %v1576_v8 = vld [vmem:[%s2047_s15 + $0x10] sm:$0xff]  }
  0x31   : > { %1422 = vmatprep.subr.bf16.mxu1 %v1646_v1 }
  0x34   : > { %1423 = vmatpush3.bf16.msra.mxu1 %v1555_v9  ;;  %v1577_v9 = vld [vmem:[%s2047_s15 + $0x18] sm:$0xff]  }
  0x35   : > { %1424 = vmatprep.subr.bf16.mxu1 %v1646_v1 }
  0x38   : > { %1425 = vmatpush3.bf16.msra.mxu1 %v1556_v10  ;;  %v1578_v10 = vld [vmem:[%s2047_s15 + $0x20] sm:$0xff]  }
  0x39   : > { %1426 = vmatprep.subr.bf16.mxu1 %v1646_v1 }
  0x3c   : > { %1427 = vmatpush3.bf16.msra.mxu1 %v1557_v11  ;;  %v1579_v11 = vld [vmem:[%s2047_s15 + $0x28] sm:$0xff]  }
  0x3d   : > { %1428 = vmatprep.subr.bf16.mxu1 %v1646_v1 }
  0x40   : > { %1429 = vmatpush3.bf16.msra.mxu1 %v1558_v12  ;;  %v1343_v12 = vld [vmem:[%s2044_s12] ss:$0 sm:$0xff] }
  0x41   : > { %1430 = vmatprep.subr.bf16.mxu1 %v1646_v1 }
  0x44   : > { %1431 = vmatpush3.bf16.msra.mxu1 %v1559_v13 }
  0x45   : > { %1432 = vmatprep.subr.bf16.mxu1 %v1646_v1 }
  0x48   : > { %1433 = vmatpush3.bf16.msra.mxu1 %v1560_v14 }
  0x49   : > { %1458 = vmatprep.subr.bf16.mxu1 %v1646_v1 }
  0xfe   : > { %v624_v18 = vpop.f32.mrb[0].mxu1 }
  0xff   : > { %v625_v19 = vadd.f32 %v1315_v17, %v624_v18  ;;  %v1416_v20 = vpop.f32.mrb[1].mxu1 }
 0x100   : > { %v627_v21 = vpop.f32.mrb[2].mxu1  ;;  %v1580_v20 = vld [vmem:[%s2047_s15 + $0x30] sm:$0xff]  }
 0x101   : > { %v630_v22 = vmax.f32 %v625_v19, 0.0  ;;  %v1417_v23 = vpop.f32.mrb[3].mxu1  ;;  %v1581_v21 = vld [vmem:[%s2047_s15 + $0x38] sm:$0xff]  }
 0x103   : > { %631 = vst [vmem:[%s1865_s29] sm:$0xff] %v630_v22  ;;  %v632_v24 = vpack.c.bf16 %v630_v22, %v630_v22  ;;  %v1347_v22 = vld [vmem:[%s2046_s14] ss:$0 sm:$0xff] }
 0x105   : > { %1435 = vmatmul.mubr.bf16.vlgmr.msra.gmra.mrb[4].mxu1 %v632_v24 }
 0x106   : > { %1460 = vmatprep.mubr.msk.bf16.mxu1 %vm1647_vm0, %v1646_v1  ;;  %1459 = vmatpush3.bf16.msra.mxu1 %v1567_v37 }
 0x107   : > { %1472 = vmatprep.subr.bf16.mxu1 %v1646_v1 }
 0x1d8   : > { %v738_v28 = vpop.f32.mrb[4].mxu1 }
 0x1d9   : > { %v739_v29 = vadd.f32 %v1321_v27, %v738_v28  ;;  %v1436_v30 = vpop.f32.mrb[5].mxu1 }
 0x1da   : > { %v741_v31 = vpop.f32.mrb[6].mxu1 }
 0x1db   : > { %v744_v32 = vmax.f32 %v739_v29, 0.0  ;;  %v1437_v33 = vpop.f32.mrb[7].mxu1 }
 0x1dd   : > { %v751_v35 = vpack.c.bf16 %v744_v32, %v744_v32  ;;  %746 = vrot.lane.b32.xlu0 %v744_v32, %s1648_s20  ;;  %s2071_s20 = sld [smem:[#allocation13_spill]] }
 0x1df   : > { %1447 = vmatmul.mubr.msk.bf16.vlgmr.msra.gmra.mrb[0].mxu0 %vm586_vm1, %v751_v35 }
 0x1e0   : > { %1451 = vmatpush3.bf16.msra.mxu0 %v1565_v34  ;;  %1454 = vmatprep.mubr.msk.bf16.mxu0 %vm1647_vm0, %v1646_v1 }
 0x1e1   : > { %1452 = vmatprep.subr.bf16.mxu0 %v1646_v1 }
 0x1e4   : > { %1453 = vmatpush3.bf16.msra.mxu0 %v1566_v36 }
 0x1e5   : > { %1464 = vmatprep.subr.bf16.mxu0 %v1646_v1 }
 0x24f   : > { %v747_v38 = vpop.permute.xlu0 %746 }
 0x250   : > { %750 = vst.msk [vmem:[%s1865_s29 + $0x8] sm:$0xff] %vm749_vm2, %v747_v38 }
 0x2b2   : > { %v828_v40 = vpop.f32.mrb[0].mxu0 }
 0x2b3   : > { %v829_v41 = vadd.f32 %v1330_v39, %v828_v40  ;;  %v1448_v42 = vpop.f32.mrb[1].mxu0 }
 0x2b4   : > { %v831_v43 = vpop.f32.mrb[2].mxu0 }
 0x2b5   : > { %v834_v44 = vmax.f32 %v829_v41, 0.0  ;;  %v1449_v45 = vpop.f32.mrb[3].mxu0 }
 0x2b7   : > { %836 = vst.msk [vmem:[%s1865_s29 + $0x10] sm:$0xff] %vm835_vm3, %v834_v44  ;;  %v837_v46 = vpack.c.bf16 %v834_v44, %v834_v44 }
 0x2b9   : > { %1455 = vmatmul.mubr.msk.bf16.vlgmr.msra.gmra.mrb[4].mxu0 %vm835_vm3, %v837_v46 }
 0x2ba   : > { %1468 = vmatprep.mubr.msk.bf16.mxu0 %vm1647_vm0, %v1646_v1  ;;  %1465 = vmatpush3.bf16.msra.mxu0 %v1568_v47 }
 0x2bb   : > { %1466 = vmatprep.subr.bf16.mxu0 %v1646_v1 }
 0x2be   : > { %1467 = vmatpush3.bf16.msra.mxu0 %v1569_v55 }
 0x2bf   : > { %1484 = vmatprep.subr.bf16.mxu0 %v1646_v1 }
 0x38c   : > { %v898_v49 = vpop.f32.mrb[4].mxu0 }
 0x38d   : > { %v899_v50 = vadd.f32 %v1336_v48, %v898_v49  ;;  %v1456_v51 = vpop.f32.mrb[5].mxu0 }
 0x38e   : > { %v901_v52 = vpop.f32.mrb[6].mxu0 }
 0x38f   : > { %v910_v53 = vpack.c.bf16 %v899_v50, %v899_v50  ;;  %905 = vrot.lane.b32.xlu0 %v899_v50, %s1649_s22  ;;  %v1457_v54 = vpop.f32.mrb[7].mxu0  ;;  %s1986_s22 = scalar_lea.hbm %s2071_s20, %s1505_s21  ;;  %s1588_s21 = scalar_lea.vmem %s1587_s24, 768 }
 0x390   : > { %p1590_p1 = scmp.lt.s32.totalorder %s1588_s21, %s1582_s30 }
 0x391   : > { %1461 = vmatmul.mubr.msk.bf16.vlgmr.msra.gmra.mrb[8].mxu1 %vm926_vm4, %v910_v53 }
 0x392   : > { %1480 = vmatprep.mubr.msk.bf16.mxu1 %vm1647_vm0, %v1646_v1  ;;  %1473 = vmatpush3.bf16.msra.mxu1 %v1570_v56  ;;  %p1591_p2 = por %p1590_p1, %p1589_p0 }
 0x393   : > { %1474 = vmatprep.subr.bf16.mxu1 %v1646_v1 }
 0x394   : > { %p1592_p3 = pnand %p1591_p2, %p1585_p13 }
 0x396   : > { %1475 = vmatpush3.bf16.msra.mxu1 %v1571_v57 }
 0x397   : > { %1476 = vmatprep.subr.bf16.mxu1 %v1646_v1 }
 0x39a   : > { %1477 = vmatpush3.bf16.msra.mxu1 %v1572_v4 }
 0x39b   : > { %1478 = vmatprep.subr.bf16.mxu1 %v1646_v1 }
 0x39e   : > { %1479 = vmatpush3.bf16.msra.mxu1 %v1573_v5 }
 0x401   : > { %v906_v58 = vpop.permute.xlu0 %905 }
 0x402   : > { %909 = vst.msk [vmem:[%s1865_s29 + $0x10] sm:$0xff] %vm908_vm5, %v906_v58 }
 0x464   : > { %v964_v60 = vpop.f32.mrb[8].mxu1 }
 0x465   : > { %v965_v61 = vadd.f32 %v1340_v59, %v964_v60  ;;  %v1462_v62 = vpop.f32.mrb[9].mxu1 }
 0x466   : > { %v967_v63 = vpop.f32.mrb[10].mxu1 }
 0x467   : > { %v970_v0 = vmax.f32 %v965_v61, 0.0  ;;  %v1463_v2 = vpop.f32.mrb[11].mxu1 }
 0x469   : > { %v971_v3 = vpack.c.bf16 %v970_v0, %v970_v0 }
 0x46b   : > { %1469 = vmatmul.mubr.msk.bf16.vlgmr.msra.gmra.mrb[8].mxu0 %vm835_vm3, %v971_v3 }
 0x46c   : > { %1500 = vmatprep.mubr.msk.bf16.mxu0 %vm1647_vm0, %v1646_v1  ;;  %1485 = vmatpush3.bf16.msra.mxu0 %v1574_v6 }
 0x46d   : > { %1486 = vmatprep.subr.bf16.mxu0 %v1646_v1 }
 0x470   : > { %1487 = vmatpush3.bf16.msra.mxu0 %v1575_v7 }
 0x471   : > { %1488 = vmatprep.subr.bf16.mxu0 %v1646_v1 }
 0x474   : > { %1489 = vmatpush3.bf16.msra.mxu0 %v1576_v8 }
 0x475   : > { %1490 = vmatprep.subr.bf16.mxu0 %v1646_v1 }
 0x478   : > { %1491 = vmatpush3.bf16.msra.mxu0 %v1577_v9 }
 0x479   : > { %1492 = vmatprep.subr.bf16.mxu0 %v1646_v1 }
 0x47c   : > { %1493 = vmatpush3.bf16.msra.mxu0 %v1578_v10 }
 0x47d   : > { %1494 = vmatprep.subr.bf16.mxu0 %v1646_v1 }
 0x480   : > { %1495 = vmatpush3.bf16.msra.mxu0 %v1579_v11 }
 0x481   : > { %1496 = vmatprep.subr.bf16.mxu0 %v1646_v1 }
 0x484   : > { %1497 = vmatpush3.bf16.msra.mxu0 %v1580_v20 }
 0x485   : > { %1498 = vmatprep.subr.bf16.mxu0 %v1646_v1  ;;  %v1353_v1 = vld [vmem:[%s2048_s16] ss:$0 sm:$0xff] }
 0x488   : > { %1499 = vmatpush3.bf16.msra.mxu0 %v1581_v21 }
 0x53e   : > { %v1032_v13 = vpop.f32.mrb[8].mxu0 }
 0x53f   : > { %v1033_v14 = vadd.f32 %v1343_v12, %v1032_v13  ;;  %v1470_v15 = vpop.f32.mrb[9].mxu0 }
 0x540   : > { %v1035_v16 = vpop.f32.mrb[10].mxu0 }
 0x541   : > { %v1038_v17 = vmax.f32 %v1033_v14, 0.0  ;;  %v1471_v18 = vpop.f32.mrb[11].mxu0 }
 0x543   : > { %v1039_v19 = vpack.c.bf16 %v1038_v17, %v1038_v17 }
 0x545   : > { %1481 = vmatmul.mubr.msk.bf16.vlgmr.msra.gmra.mrb[12].mxu1 %vm586_vm1, %v1039_v19 }
 0x618   : > { %v1116_v23 = vpop.f32.mrb[12].mxu1 }
 0x619   : > { %v1117_v24 = vadd.f32 %v1347_v22, %v1116_v23  ;;  %v1482_v25 = vpop.f32.mrb[13].mxu1 }
 0x61a   : > { %v1119_v26 = vpop.f32.mrb[14].mxu1 }
 0x61b   : > { %v1122_v27 = vmax.f32 %v1117_v24, 0.0  ;;  %v1483_v28 = vpop.f32.mrb[15].mxu1 }
 0x61d   : > { %v1123_v29 = vpack.c.bf16 %v1122_v27, %v1122_v27 }
 0x61f   : > { %1501 = vmatmul.mubr.bf16.vlgmr.msra.gmra.mrb[12].mxu0 %v1123_v29 }
 0x6f2   : > { %v1229_v30 = vpop.f32.mrb[12].mxu0 }
 0x6f3   : > { %v1230_v31 = vadd.f32 %v1353_v1, %v1229_v30  ;;  %v1502_v32 = vpop.f32.mrb[13].mxu0 }
 0x6f4   : > { %v1232_v33 = vpop.f32.mrb[14].mxu0 }
 0x6f5   : > { %1235 = vst.msk [vmem:[%s1865_s29 + $0x8] sm:$0xff] %vm586_vm1, %v1230_v31  ;;  %v1503_v34 = vpop.f32.mrb[15].mxu0 }
 0x6f6   : > { %1595 = shalt.err (!%p1592_p3)
}
 0x6f7   : > { %s1596_s0 = scalar_lea.hbm %s1986_s22, 384  ;;  %s1600_s27 = scalar_lea.hbm %s2071_s20, 768 }
 0x6f8   : > { %p1597_p4 = scmp.ne.s32.totalorder %s1986_s22, %s1596_s0  ;;  %p1601_p9 = scmp.lt.u32.totalorder %s1986_s22, %s2071_s20 }
 0x6f9   : > { %p1602_p10 = scmp.lt.u32.totalorder %s1600_s27, %s1596_s0  ;;  %p1604_p12 = scmp.lt.u32.totalorder %s1596_s0, %s1986_s22 }
 0x6fa   : > { %p1598_p7 = pnand %p1597_p4, %p1779_p5 }
 0x6fb   : > { %p1603_p11 = por %p1602_p10, %p1601_p9 }
 0x6fc   : > { %p1599_p8 = pneg %p1598_p7 }
 0x6fd   : > { %p1605_p13 = por %p1604_p12, %p1603_p11 }
 0x6ff   : > { %p1606_p0 = pnand %p1605_p13, %p1599_p8 }
 0x701   : > { %1609 = shalt.err (!%p1606_p0)
}
 0x702   : > { %1506 = dma.vmem_to_hbm [thread:$0]  (%p1779_p5), %s1988_s17, 384, %s1986_s22, %s1237_s28  }
 0x703 PF: > { %s2072_s30 = sld [smem:[#allocation7_spill]]  ;;  %s2073_s24 = sld [smem:[#allocation5_spill]] }
 0x709   : > { %p1512_p1 = scmp.ge.s32.totalorder %s2072_s30, 2  ;;  %s1263_s29 = sand.u32 1, %s2073_s24  }
 0x70a   : > { %s1264_s26 = scalar_lea.sflag [#allocation3], %s1263_s29 }
 0x70b   : > { %p1509_p2 = pnand %p1512_p1, %p1783_p6 }
 0x70d   : > { %1627 = dma.done.wait (!%p1509_p2), %s1264_s26, 384  }
 0x70e   : > { %1629 = vsyncadd (!%p1509_p2), %s1264_s26, 4294966912  ;;  %s2075_s27 = sld [smem:[#allocation8_spill]]  ;;  %s2076_s0 = sld [smem:[#allocation6_spill]] }
 0x70f   : > { %s2077_s26 = sld [smem:[#allocation9_spill]]  ;;  %s2078_s24 = smov %s1636_s25 }
 0x714   : > { %p27_p3 = scmp.ge.s32.totalorder %s2075_s27, 4   ;;  %s2079_s25 = smov %s2076_s0 }
 0x716   :  { %29 = sbr.rel (!%p27_p3) target bundleno = 7 (0x7), region = 123 }
 0x71d   :  { %1269 = vsyncpa [#allocation3], 1 }
 0x71e   :  { %1271 = vsyncpa [#allocation3 + $0x1], 1 }

</bundles_post_ra>
